<compile_context>
chip_gen: v6e
topology: v6e:2x2x1
jax: 0.10.0
libtpu: 0.0.40
codegen_flags: <defaults>
</compile_context>

<pallas_src>
import functools

import jax
import jax.numpy as jnp
from jax import lax
from jax.experimental import pallas as pl
from jax.experimental.pallas import tpu as pltpu

_LANES = 128
_SUBLANES = 8
# ~2 MiB per input stream per grid step (4096 rows f32 / 8192 rows bf16).
_TARGET_STREAM_BYTES = 2 * 1024 * 1024
# Budget for the double-buffered input windows (leaves headroom for in-kernel
# chunk temporaries + output inside the 32 MiB limit requested below).
_INPUT_WINDOW_BUDGET = 20 * 1024 * 1024
_VMEM_LIMIT_BYTES = 32 * 1024 * 1024
# Strip-mine per-level compute into <=512-row chunks: in-kernel f32 temps stay
# ~256 KiB each instead of multi-MiB full-block arrays (matters on v7x).
_CHUNK_ROWS = 512


def _cdiv(a, b):
    return -(-a // b)


def _round_up(x, m):
    return ((x + m - 1) // m) * m


def _as_rows128(x):
    """Flatten to a lane-dense (rows, 128) slab in native dtype.

    Pads only to a multiple of 128 (lane width), not 8*128: ragged row counts
    are handled in-kernel (full-array blocks / masked ragged last blocks), so
    the rare-path jnp.pad copy triggers less often.  Zero padding contributes
    0 to both the l1 and l2 sums.
    """
    flat = x.reshape(-1)
    n = flat.shape[0]
    pad = _round_up(n, _LANES) - n
    if pad:
        flat = jnp.pad(flat, (0, pad))
    return flat.reshape(-1, _LANES)


def _reduce_rows(dd):
    """(rows, 128) f32 -> (8, 128) partial sum with up to 8 independent chains."""
    rows = dd.shape[0]
    main = rows - rows % _SUBLANES
    acc = None
    if main:
        sub = main // _SUBLANES
        k = next(c for c in (8, 4, 2, 1) if sub % c == 0)
        # (sub//k, k, 8, 128): summing axis 0 gives k independent vreg
        # accumulators (breaks the serial add chain), folded with k-1 adds.
        acc = dd[:main].reshape(sub // k, k, _SUBLANES, _LANES).sum(axis=0).sum(axis=0)
    tail = rows - main
    if tail:
        # Rare path (only for tiny / non-multiple-of-8 row counts): pad the
        # <8-row tail with zero rows so it adds into the (8,128) accumulator.
        t = jnp.concatenate(
            [dd[main:], jnp.zeros((_SUBLANES - tail, _LANES), jnp.float32)], axis=0)
        acc = t if acc is None else acc + t
    return acc


def _texture_loss_kernel(*refs, level_params, loss_type, grid_len, accum_mode):
    """refs = (m0, t0, m1, t1, ..., o_ref, acc_ref).

    level_params[lv] = (block_rows, rows, nb, weight) — all static.
    """
    o_ref, acc_ref = refs[-2], refs[-1]
    in_refs = refs[:-2]
    i = pl.program_id(0)

    if accum_mode:
        @pl.when(i == 0)
        def _zero():
            acc_ref[...] = jnp.zeros_like(acc_ref)
    else:
        acc_ref[...] = jnp.zeros_like(acc_ref)

    for lv, (block_rows, rows, nb, weight) in enumerate(level_params):
        m_ref = in_refs[2 * lv]
        t_ref = in_refs[2 * lv + 1]

        # Static strip-mining of the block into <=_CHUNK_ROWS chunks.
        chunks = []
        start = 0
        while start < block_rows:
            size = min(_CHUNK_ROWS, block_rows - start)
            chunks.append((start, size))
            start += size

        def do_accumulate(masked, chunks=chunks, m_ref=m_ref, t_ref=t_ref,
                          block_rows=block_rows, rows=rows, weight=weight):
            part = jnp.zeros((_SUBLANES, _LANES), jnp.float32)
            for (c0, csz) in chunks:
                mm = m_ref[c0:c0 + csz, :].astype(jnp.float32)
                tt = t_ref[c0:c0 + csz, :].astype(jnp.float32)
                d = mm - tt
                dd = d * d if loss_type == "l2" else jnp.abs(d)
                if masked:
                    # Mask garbage rows past the slab edge (ragged last block).
                    row = lax.broadcasted_iota(jnp.int32, (csz, _LANES), 0)
                    valid = (i * block_rows + c0 + row) < rows
                    dd = jnp.where(valid, dd, jnp.float32(0.0))
                part = part + _reduce_rows(dd)
            acc_ref[...] += part * jnp.float32(weight)

        tail_ragged = (rows % block_rows) != 0
        if not tail_ragged:
            if nb == grid_len:
                # Every grid step maps to a fully valid block: no mask, no gate.
                do_accumulate(False)
            else:
                # Fewer blocks than grid steps: skip clamped repeat steps.
                @pl.when(i < nb)
                def _full():
                    do_accumulate(False)
        else:
            if nb > 1:
                @pl.when(i < nb - 1)
                def _interior():
                    do_accumulate(False)

            @pl.when(i == nb - 1)
            def _tail():
                do_accumulate(True)
            # i > nb - 1 (clamped repeats): contributes nothing, skip entirely.

    if accum_mode:
        @pl.when(i == grid_len - 1)
        def _store():
            o_ref[0, 0] = jnp.sum(acc_ref[...])
    else:
        o_ref[0] = acc_ref[...]


def _tc_count():
    """Best-effort detection of multi-TensorCore chips (v7x has 2 TCs/chip)."""
    try:
        kind = jax.devices()[0].device_kind.lower()
    except Exception:
        return 1
    return 2 if ("v7" in kind or "7x" in kind) else 1


def _fused_texture_loss(pairs, loss_type):
    """pairs: list of (map, T) arrays (same shape per pair). Returns the scalar loss."""
    num_levels = len(pairs)
    slabs, rows_list, stream_itemsize = [], [], []
    for m, t in pairs:
        assert m.shape == t.shape, (m.shape, t.shape)
        a2d = _as_rows128(m)
        b2d = _as_rows128(t)
        slabs.extend((a2d, b2d))
        rows_list.append(a2d.shape[0])
        stream_itemsize.append(jnp.dtype(m.dtype).itemsize + jnp.dtype(t.dtype).itemsize)

    multi_tc = _tc_count() >= 2

    def plan(shrink):
        caps = []
        for (m, _t) in pairs:
            itemsize = jnp.dtype(m.dtype).itemsize
            cap = max(_SUBLANES,
                      ((_TARGET_STREAM_BYTES // shrink) // (_LANES * itemsize))
                      // _SUBLANES * _SUBLANES)
            caps.append(cap)
        gl = max(_cdiv(r, c) for r, c in zip(rows_list, caps))
        # v7x: keep an even grid of >= 2 steps so the "parallel" axis can shard
        # row blocks across both TensorCores (only when there is real work).
        if multi_tc and max(rows_list) >= 2 * _SUBLANES:
            gl = max(gl, 2)
            if gl % 2:
                gl += 1
        levels, window = [], 0
        for rows, cap, isz in zip(rows_list, caps, stream_itemsize):
            want = min(cap, _cdiv(rows, gl))
            block_rows = _round_up(want, _SUBLANES)
            if block_rows >= rows:
                block_rows = rows  # single full-array block (any row count OK)
            nb = _cdiv(rows, block_rows)
            levels.append((block_rows, rows, nb))
            window += block_rows * _LANES * isz
        return gl, levels, window

    shrink = 1
    grid_len, levels, window = plan(shrink)
    while 2 * window > _INPUT_WINDOW_BUDGET and shrink < 64:
        shrink *= 2
        grid_len, levels, window = plan(shrink)

    parallel_out = multi_tc and grid_len >= 2

    in_specs = []
    level_params = []
    for (m, _t), (block_rows, rows, nb) in zip(pairs, levels):
        if nb == grid_len:
            idx_map = lambda i: (i, 0)
        else:
            # Fewer blocks than grid steps: clamp to the last real block; the
            # kernel skips/masks those steps.
            idx_map = lambda i, _nb=nb: (jnp.minimum(i, _nb - 1), 0)
        in_specs.extend((pl.BlockSpec((block_rows, _LANES), idx_map),) * 2)
        # F.mse_loss / F.l1_loss 'mean' over the unpadded element count, plus
        # the final division by the number of levels, baked in as a scale.
        level_params.append((block_rows, rows, nb, 1.0 / (num_levels * m.size)))

    kernel = functools.partial(
        _texture_loss_kernel,
        level_params=tuple(level_params),
        loss_type=loss_type,
        grid_len=grid_len,
        accum_mode=not parallel_out,
    )

    total_elems = sum(int(m.size) for m, _ in pairs)
    bytes_in = sum(int(x.size) * x.dtype.itemsize for x in slabs)

    if parallel_out:
        # v7x: distinct per-step output blocks so both TensorCores get work.
        out_shape = jax.ShapeDtypeStruct((grid_len, _SUBLANES, _LANES), jnp.float32)
        out_specs = pl.BlockSpec((1, _SUBLANES, _LANES), lambda i: (i, 0, 0))
        semantics = ("parallel",)
        bytes_out = grid_len * _SUBLANES * _LANES * 4
    else:
        # Single-TC chips (v5e/v6e): VMEM accumulator across the whole grid,
        # single scalar SMEM output, no trailing XLA reduction.
        out_shape = jax.ShapeDtypeStruct((1, 1), jnp.float32)
        out_specs = pl.BlockSpec(memory_space=pltpu.MemorySpace.SMEM)
        semantics = ("arbitrary",)
        bytes_out = 4

    cost = pl.CostEstimate(flops=3 * total_elems, transcendentals=0,
                           bytes_accessed=bytes_in + bytes_out)

    out = pl.pallas_call(
        kernel,
        out_shape=out_shape,
        grid_spec=pltpu.PrefetchScalarGridSpec(
            num_scalar_prefetch=0,
            grid=(grid_len,),
            in_specs=in_specs,
            out_specs=out_specs,
            scratch_shapes=[pltpu.VMEM((_SUBLANES, _LANES), jnp.float32)],
        ),
        compiler_params=pltpu.CompilerParams(
            dimension_semantics=semantics,
            vmem_limit_bytes=_VMEM_LIMIT_BYTES,
        ),
        cost_estimate=cost,
    )(*slabs)

    if parallel_out:
        return jnp.sum(out)
    return out[0, 0]


@functools.partial(jax.jit, static_argnames=("use_S", "loss_type"))
def t_perceptual_loss(map_lv3, map_lv2, map_lv1, S, T_lv3, T_lv2, T_lv1,
                      use_S=False, loss_type="l2"):
    """JAX/Pallas port of TPerceptualLoss.forward (use_S=False path)."""
    assert loss_type in ("l1", "l2")
    if use_S:
        # TODO(synk): use_S=True needs PyTorch-style bicubic upsampling of S
        # (align_corners=False) + sigmoid weighting; not implemented here.
        raise NotImplementedError("use_S=True path not implemented")

    pairs = [(map_lv3, T_lv3)]
    if T_lv2 is not None:
        pairs.append((map_lv2, T_lv2))
    if T_lv1 is not None:
        pairs.append((map_lv1, T_lv1))
    return _fused_texture_loss(pairs, loss_type)


if __name__ == "__main__":
    key = jax.random.PRNGKey(0)
    ks = jax.random.split(key, 7)

    B = 2
    # lv3: coarse features; lv2: 2x spatial, half channels; lv1: 4x spatial.
    map_lv3 = jax.random.normal(ks[0], (B, 8, 8, 8), dtype=jnp.float32)
    map_lv2 = jax.random.normal(ks[1], (B, 4, 16, 16), dtype=jnp.float32)
    map_lv1 = jax.random.normal(ks[2], (B, 2, 32, 32), dtype=jnp.float32)
    T_lv3 = jax.random.normal(ks[3], (B, 8, 8, 8), dtype=jnp.float32)
    T_lv2 = jax.random.normal(ks[4], (B, 4, 16, 16), dtype=jnp.float32)
    T_lv1 = jax.random.normal(ks[5], (B, 2, 32, 32), dtype=jnp.float32)
    S = jax.random.normal(ks[6], (B, 1, 8, 8), dtype=jnp.float32)  # unused (use_S=False)

    # --- L2, all three levels -------------------------------------------------
    loss_l2 = t_perceptual_loss(map_lv3, map_lv2, map_lv1, S, T_lv3, T_lv2, T_lv1,
                                use_S=False, loss_type="l2")
    loss_l2 = jax.block_until_ready(loss_l2)
    ref_l2 = (jnp.mean((map_lv3 - T_lv3) ** 2)
              + jnp.mean((map_lv2 - T_lv2) ** 2)
              + jnp.mean((map_lv1 - T_lv1) ** 2)) / 3.0
    assert jnp.allclose(loss_l2, ref_l2, rtol=1e-5, atol=1e-6), (loss_l2, ref_l2)

    # --- L1, all three levels -------------------------------------------------
    loss_l1 = t_perceptual_loss(map_lv3, map_lv2, map_lv1, S, T_lv3, T_lv2, T_lv1,
                                use_S=False, loss_type="l1")
    loss_l1 = jax.block_until_ready(loss_l1)
    ref_l1 = (jnp.mean(jnp.abs(map_lv3 - T_lv3))
              + jnp.mean(jnp.abs(map_lv2 - T_lv2))
              + jnp.mean(jnp.abs(map_lv1 - T_lv1))) / 3.0
    assert jnp.allclose(loss_l1, ref_l1, rtol=1e-5, atol=1e-6), (loss_l1, ref_l1)

    # --- L2 with T_lv1 missing (module divides by the non-None count) --------
    loss_2lv = t_perceptual_loss(map_lv3, map_lv2, map_lv1, S, T_lv3, T_lv2, None,
                                 use_S=False, loss_type="l2")
    loss_2lv = jax.block_until_ready(loss_2lv)
    ref_2lv = (jnp.mean((map_lv3 - T_lv3) ** 2)
               + jnp.mean((map_lv2 - T_lv2) ** 2)) / 2.0
    assert jnp.allclose(loss_2lv, ref_2lv, rtol=1e-5, atol=1e-6), (loss_2lv, ref_2lv)

    print("KERNEL_OK")
</pallas_src>

<mosaic_0001>
module attributes {stable_mosaic.version = 11 : i64} {
  func.func @_texture_loss_kernel(%arg0: i32, %arg1: memref<8x128xf32, #tpu.memory_space<vmem>>, %arg2: memref<8x128xf32, #tpu.memory_space<vmem>>, %arg3: memref<16x128xf32, #tpu.memory_space<vmem>>, %arg4: memref<16x128xf32, #tpu.memory_space<vmem>>, %arg5: memref<32x128xf32, #tpu.memory_space<vmem>>, %arg6: memref<32x128xf32, #tpu.memory_space<vmem>>, %arg7: memref<1x1xf32, #tpu.memory_space<smem>>, %arg8: memref<8x128xf32, #tpu.memory_space<vmem>>) attributes {dimension_semantics = [#tpu.dimension_semantics<arbitrary>], iteration_bounds = array<i64: 1>, scalar_prefetch = 0 : i64, scratch_operands = 1 : i64, tpu.core_type = #tpu.core_type<tc>, window_params = [{transform_indices = @transform_0, window_bounds = array<i64: 8, 128>}, {transform_indices = @transform_1, window_bounds = array<i64: 8, 128>}, {transform_indices = @transform_2, window_bounds = array<i64: 16, 128>}, {transform_indices = @transform_3, window_bounds = array<i64: 16, 128>}, {transform_indices = @transform_4, window_bounds = array<i64: 32, 128>}, {transform_indices = @transform_5, window_bounds = array<i64: 32, 128>}, {transform_indices = @transform_6, window_bounds = array<i64: 1, 1>}]} {
    %c0_i32 = arith.constant 0 : i32
    %0 = arith.cmpi eq, %arg0, %c0_i32 : i32
    %1 = arith.extui %0 : i1 to i32
    %c0_i32_0 = arith.constant 0 : i32
    %2 = arith.cmpi ne, %1, %c0_i32_0 : i32
    scf.if %2 {
      %cst_37 = arith.constant 0.000000e+00 : f32
      %48 = vector.broadcast %cst_37 : f32 to vector<8x128xf32>
      %c0_38 = arith.constant 0 : index
      %c0_39 = arith.constant 0 : index
      %49 = vector.load %arg8[%c0_38, %c0_39] : memref<8x128xf32, #tpu.memory_space<vmem>>, vector<8x128xf32>
      tpu.vector_store %arg8[%c0_38, %c0_39], %48 {strides = array<i32>} : memref<8x128xf32, #tpu.memory_space<vmem>>, vector<8x128xf32>,
    } else {
    }
    %cst = arith.constant 0.000000e+00 : f32
    %3 = vector.broadcast %cst : f32 to vector<8x128xf32>
    %c0 = arith.constant 0 : index
    %c0_1 = arith.constant 0 : index
    %4 = vector.load %arg1[%c0, %c0_1] : memref<8x128xf32, #tpu.memory_space<vmem>>, vector<8x128xf32>
    %c0_2 = arith.constant 0 : index
    %c0_3 = arith.constant 0 : index
    %5 = vector.load %arg2[%c0_2, %c0_3] : memref<8x128xf32, #tpu.memory_space<vmem>>, vector<8x128xf32>
    %6 = arith.subf %4, %5 : vector<8x128xf32>
    %7 = arith.mulf %6, %6 : vector<8x128xf32>
    %8 = vector.shape_cast %7 : vector<8x128xf32> to vector<1x1x8x128xf32>
    %cst_4 = arith.constant dense<0.000000e+00> : vector<1x8x128xf32>
    %9 = vector.multi_reduction <add>, %8, %cst_4 [0] : vector<1x1x8x128xf32> to vector<1x8x128xf32>
    %cst_5 = arith.constant dense<0.000000e+00> : vector<8x128xf32>
    %10 = vector.multi_reduction <add>, %9, %cst_5 [0] : vector<1x8x128xf32> to vector<8x128xf32>
    %11 = arith.addf %3, %10 : vector<8x128xf32>
    %c0_6 = arith.constant 0 : index
    %c0_7 = arith.constant 0 : index
    %12 = vector.load %arg8[%c0_6, %c0_7] : memref<8x128xf32, #tpu.memory_space<vmem>>, vector<8x128xf32>
    %cst_8 = arith.constant 3.25520843E-4 : f32
    %13 = vector.broadcast %cst_8 : f32 to vector<8x128xf32>
    %14 = arith.mulf %11, %13 : vector<8x128xf32>
    %15 = arith.addf %12, %14 : vector<8x128xf32>
    %c0_9 = arith.constant 0 : index
    %c0_10 = arith.constant 0 : index
    %16 = vector.load %arg8[%c0_9, %c0_10] : memref<8x128xf32, #tpu.memory_space<vmem>>, vector<8x128xf32>
    tpu.vector_store %arg8[%c0_9, %c0_10], %15 {strides = array<i32>} : memref<8x128xf32, #tpu.memory_space<vmem>>, vector<8x128xf32>,
    %cst_11 = arith.constant 0.000000e+00 : f32
    %17 = vector.broadcast %cst_11 : f32 to vector<8x128xf32>
    %c0_12 = arith.constant 0 : index
    %c0_13 = arith.constant 0 : index
    %18 = vector.load %arg3[%c0_12, %c0_13] : memref<16x128xf32, #tpu.memory_space<vmem>>, vector<16x128xf32>
    %c0_14 = arith.constant 0 : index
    %c0_15 = arith.constant 0 : index
    %19 = vector.load %arg4[%c0_14, %c0_15] : memref<16x128xf32, #tpu.memory_space<vmem>>, vector<16x128xf32>
    %20 = arith.subf %18, %19 : vector<16x128xf32>
    %21 = arith.mulf %20, %20 : vector<16x128xf32>
    %22 = vector.shape_cast %21 : vector<16x128xf32> to vector<1x2x8x128xf32>
    %cst_16 = arith.constant dense<0.000000e+00> : vector<2x8x128xf32>
    %23 = vector.multi_reduction <add>, %22, %cst_16 [0] : vector<1x2x8x128xf32> to vector<2x8x128xf32>
    %cst_17 = arith.constant dense<0.000000e+00> : vector<8x128xf32>
    %24 = vector.multi_reduction <add>, %23, %cst_17 [0] : vector<2x8x128xf32> to vector<8x128xf32>
    %25 = arith.addf %17, %24 : vector<8x128xf32>
    %c0_18 = arith.constant 0 : index
    %c0_19 = arith.constant 0 : index
    %26 = vector.load %arg8[%c0_18, %c0_19] : memref<8x128xf32, #tpu.memory_space<vmem>>, vector<8x128xf32>
    %cst_20 = arith.constant 1.62760422E-4 : f32
    %27 = vector.broadcast %cst_20 : f32 to vector<8x128xf32>
    %28 = arith.mulf %25, %27 : vector<8x128xf32>
    %29 = arith.addf %26, %28 : vector<8x128xf32>
    %c0_21 = arith.constant 0 : index
    %c0_22 = arith.constant 0 : index
    %30 = vector.load %arg8[%c0_21, %c0_22] : memref<8x128xf32, #tpu.memory_space<vmem>>, vector<8x128xf32>
    tpu.vector_store %arg8[%c0_21, %c0_22], %29 {strides = array<i32>} : memref<8x128xf32, #tpu.memory_space<vmem>>, vector<8x128xf32>,
    %cst_23 = arith.constant 0.000000e+00 : f32
    %31 = vector.broadcast %cst_23 : f32 to vector<8x128xf32>
    %c0_24 = arith.constant 0 : index
    %c0_25 = arith.constant 0 : index
    %32 = vector.load %arg5[%c0_24, %c0_25] : memref<32x128xf32, #tpu.memory_space<vmem>>, vector<32x128xf32>
    %c0_26 = arith.constant 0 : index
    %c0_27 = arith.constant 0 : index
    %33 = vector.load %arg6[%c0_26, %c0_27] : memref<32x128xf32, #tpu.memory_space<vmem>>, vector<32x128xf32>
    %34 = arith.subf %32, %33 : vector<32x128xf32>
    %35 = arith.mulf %34, %34 : vector<32x128xf32>
    %36 = vector.shape_cast %35 : vector<32x128xf32> to vector<1x4x8x128xf32>
    %cst_28 = arith.constant dense<0.000000e+00> : vector<4x8x128xf32>
    %37 = vector.multi_reduction <add>, %36, %cst_28 [0] : vector<1x4x8x128xf32> to vector<4x8x128xf32>
    %cst_29 = arith.constant dense<0.000000e+00> : vector<8x128xf32>
    %38 = vector.multi_reduction <add>, %37, %cst_29 [0] : vector<4x8x128xf32> to vector<8x128xf32>
    %39 = arith.addf %31, %38 : vector<8x128xf32>
    %c0_30 = arith.constant 0 : index
    %c0_31 = arith.constant 0 : index
    %40 = vector.load %arg8[%c0_30, %c0_31] : memref<8x128xf32, #tpu.memory_space<vmem>>, vector<8x128xf32>
    %cst_32 = arith.constant 8.13802107E-5 : f32
    %41 = vector.broadcast %cst_32 : f32 to vector<8x128xf32>
    %42 = arith.mulf %39, %41 : vector<8x128xf32>
    %43 = arith.addf %40, %42 : vector<8x128xf32>
    %c0_33 = arith.constant 0 : index
    %c0_34 = arith.constant 0 : index
    %44 = vector.load %arg8[%c0_33, %c0_34] : memref<8x128xf32, #tpu.memory_space<vmem>>, vector<8x128xf32>
    tpu.vector_store %arg8[%c0_33, %c0_34], %43 {strides = array<i32>} : memref<8x128xf32, #tpu.memory_space<vmem>>, vector<8x128xf32>,
    %c0_i32_35 = arith.constant 0 : i32
    %45 = arith.cmpi eq, %arg0, %c0_i32_35 : i32
    %46 = arith.extui %45 : i1 to i32
    %c0_i32_36 = arith.constant 0 : i32
    %47 = arith.cmpi ne, %46, %c0_i32_36 : i32
    scf.if %47 {
      %c0_37 = arith.constant 0 : index
      %c0_38 = arith.constant 0 : index
      %48 = vector.load %arg8[%c0_37, %c0_38] : memref<8x128xf32, #tpu.memory_space<vmem>>, vector<8x128xf32>
      %49 = vector.shape_cast %48 : vector<8x128xf32> to vector<1x8x128xf32>
      %cst_39 = arith.constant dense<0.000000e+00> : vector<1xf32>
      %50 = vector.multi_reduction <add>, %49, %cst_39 [1, 2] : vector<1x8x128xf32> to vector<1xf32>
      %51 = vector.shape_cast %50 : vector<1xf32> to vector<1x1x1xf32>
      %52 = vector.extract %51[0, 0, 0] : f32 from vector<1x1x1xf32>
      %c0_40 = arith.constant 0 : index
      %c0_41 = arith.constant 0 : index
      %53 = memref.load %arg7[%c0_40, %c0_41] : memref<1x1xf32, #tpu.memory_space<smem>>
      memref.store %52, %arg7[%c0_40, %c0_41] : memref<1x1xf32, #tpu.memory_space<smem>>
    } else {
    }
    return
  }
  func.func @transform_0(%arg0: i32) -> (i32, i32) {
    %c0_i32 = arith.constant 0 : i32
    %c0_i32_0 = arith.constant 0 : i32
    return %arg0, %c0_i32 : i32, i32
  }
  func.func @transform_1(%arg0: i32) -> (i32, i32) {
    %c0_i32 = arith.constant 0 : i32
    %c0_i32_0 = arith.constant 0 : i32
    return %arg0, %c0_i32 : i32, i32
  }
  func.func @transform_2(%arg0: i32) -> (i32, i32) {
    %c0_i32 = arith.constant 0 : i32
    %c0_i32_0 = arith.constant 0 : i32
    return %arg0, %c0_i32 : i32, i32
  }
  func.func @transform_3(%arg0: i32) -> (i32, i32) {
    %c0_i32 = arith.constant 0 : i32
    %c0_i32_0 = arith.constant 0 : i32
    return %arg0, %c0_i32 : i32, i32
  }
  func.func @transform_4(%arg0: i32) -> (i32, i32) {
    %c0_i32 = arith.constant 0 : i32
    %c0_i32_0 = arith.constant 0 : i32
    return %arg0, %c0_i32 : i32, i32
  }
  func.func @transform_5(%arg0: i32) -> (i32, i32) {
    %c0_i32 = arith.constant 0 : i32
    %c0_i32_0 = arith.constant 0 : i32
    return %arg0, %c0_i32 : i32, i32
  }
  func.func @transform_6(%arg0: i32) -> (i32, i32) {
    %c0_i32 = arith.constant 0 : i32
    %c0_i32_0 = arith.constant 0 : i32
    %c0_i32_1 = arith.constant 0 : i32
    return %c0_i32, %c0_i32_0 : i32, i32
  }
}

</mosaic_0001>

<bundles_post_ra>
// kernel: t_perceptual_loss.1
= control target key start
LH: loop header
LB: loop body
LE: loop exit
PB: predicated region body
PF: predicated region fallthrough
CT: control target
= control target key end

     0   :  { %s206_s0 = inlined_call_operand.vmem [shape: f32[8,128], index: 0, kind: input, shape index: {}]   ;;  %s207_s1 = inlined_call_operand.vmem [shape: f32[8,128], index: 1, kind: input, shape index: {}]   ;;  %s208_s2 = inlined_call_operand.vmem [shape: f32[16,128], index: 2, kind: input, shape index: {}]   ;;  %s209_s3 = inlined_call_operand.vmem [shape: f32[16,128], index: 3, kind: input, shape index: {}]   ;;  %s210_s4 = inlined_call_operand.vmem [shape: f32[32,128], index: 4, kind: input, shape index: {}]   ;;  %s211_s5 = inlined_call_operand.vmem [shape: f32[32,128], index: 5, kind: input, shape index: {}]   ;;  %s212_s6 = inlined_call_operand.hbm [shape: f32[1,1], index: 6, kind: output, shape index: {}]  }
   0x1   :  { %v29_v0 = vld [vmem:[%s206_s0] sm:$0xff]  ;;  %v41_v4 = vld [vmem:[%s208_s2 + $0x8] sm:$0xff]  ;;  %v58_v11 = vld [vmem:[%s210_s4 + $0x10] sm:$0xff] }
   0x2   :  { %v30_v1 = vld [vmem:[%s207_s1] sm:$0xff]  ;;  %v43_v6 = vld [vmem:[%s209_s3 + $0x8] sm:$0xff]  ;;  %v59_v13 = vld [vmem:[%s210_s4 + $0x18] sm:$0xff] }
   0x3   :  { %v40_v2 = vld [vmem:[%s208_s2] sm:$0xff]  ;;  %v31_v3 = vsub.f32 %v29_v0, %v30_v1  ;;  %v45_v8 = vsub.f32 %v41_v4, %v43_v6  ;;  %v57_v10 = vld [vmem:[%s210_s4 + $0x8] sm:$0xff]  ;;  %v62_v18 = vld [vmem:[%s211_s5 + $0x10] sm:$0xff] }
   0x4   :  { %v42_v5 = vld [vmem:[%s209_s3] sm:$0xff]  ;;  %v61_v15 = vld [vmem:[%s211_s5 + $0x8] sm:$0xff]  ;;  %v63_v19 = vld [vmem:[%s211_s5 + $0x18] sm:$0xff] }
   0x5   :  { %v44_v7 = vsub.f32 %v40_v2, %v42_v5  ;;  %v56_v9 = vld [vmem:[%s210_s4] sm:$0xff]  ;;  %v32_v12 = vmul.f32 %v31_v3, %v31_v3  ;;  %v47_v17 = vmul.f32 %v45_v8, %v45_v8  ;;  %v65_v21 = vsub.f32 %v57_v10, %v61_v15 }
   0x6   :  { %v60_v14 = vld [vmem:[%s211_s5] sm:$0xff] }
   0x7   :  { %v46_v16 = vmul.f32 %v44_v7, %v44_v7  ;;  %v64_v20 = vsub.f32 %v56_v9, %v60_v14 }
   0x8   :  { %11 = vsyncpa [#allocation4], 0  ;;  %v66_v22 = vsub.f32 %v58_v11, %v62_v18  ;;  %v67_v23 = vsub.f32 %v59_v13, %v63_v19  ;;  %v69_v26 = vmul.f32 %v65_v21, %v65_v21  ;;  %v37_v28 = vmul.f32 0.00032552084, %v32_v12  ;;  %s125_s5 = smov [#allocation3]  }
   0x9   :  { %v50_v24 = vadd.f32 %v47_v17, %v46_v16  ;;  %v68_v25 = vmul.f32 %v64_v20, %v64_v20 }
   0xa   :  { %v70_v27 = vmul.f32 %v66_v22, %v66_v22  ;;  %v71_v30 = vmul.f32 %v67_v23, %v67_v23 }
   0xb   :  { %v53_v29 = vmul.f32 0.00016276042, %v50_v24  ;;  %v76_v31 = vadd.f32 %v69_v26, %v68_v25 }
   0xd   :  { %v77_v32 = vadd.f32 %v76_v31, %v70_v27  ;;  %v54_v33 = vadd.f32 %v53_v29, %v37_v28 }
   0xf   :  { %v78_v34 = vadd.f32 %v77_v32, %v71_v30 }
  0x11   :  { %v81_v35 = vmul.f32 8.138021e-05, %v78_v34 }
  0x13   :  { %v82_v36 = vadd.f32 %v81_v35, %v54_v33 }
  0x15   :  { %88 = vadd.xlane.f32.xlu0 %v82_v36 }
  0x9e   :  { %v89_v37 = vpop.xlane.xlu0 %88 }
  0x9f   :  { %v90_v38 = vrot.slane %v89_v37, 4 }
  0xa1   :  { %v91_v39 = vadd.f32 %v90_v38, %v89_v37 }
  0xa3   :  { %v92_v40 = vrot.slane %v91_v39, 2 }
  0xa5   :  { %v93_v41 = vadd.f32 %v92_v40, %v91_v39 }
  0xa7   :  { %v94_v42 = vrot.slane %v93_v41, 1 }
  0xa9   :  { %v95_v43 = vadd.f32 %v94_v42, %v93_v41 }
  0xab   :  { %112 = vpush %v95_v43 }
  0xdc   :  { %s113_s4 = spop %112 }
  0xdd   :  { %98 = sst [smem:[#allocation3]] %s113_s4 }
  0xde   :  { %106 = dma.smem_to_hbm %s125_s5, 16, %s212_s6, [#allocation4]  }
  0xdf   :  { %123 = dma.done.wait [#allocation4], 16  }
  0xe0   :  { %124 = vsyncadd [#allocation4], 4294967280 }
  0xe1   :  { %110 = sfence }
  0xe2   :  { %111 = vsyncpa [#allocation4], 1 }

</bundles_post_ra>
